<compile_context>
chip_gen: v7x
topology: tpu7x:2x2x1
jax: 0.10.0
libtpu: 0.0.40
codegen_flags: <defaults>
</compile_context>

<pallas_src>
import functools

import jax
import jax.numpy as jnp
from jax.experimental import pallas as pl
from jax.experimental.pallas import tpu as pltpu


# ---------------------------------------------------------------------------
# Kernel
# ---------------------------------------------------------------------------
def _qnet_kernel(ma_ref, x_ref, w1_ref, b1_ref, w2_ref, b2_ref, w3_ref, b3_ref,
                 o_ref):
    """Fused 3-layer MLP: relu(xW1+b1) -> relu(.W2+b2) -> max_action*tanh(.W3+b3).

    x_ref : (TB, Sp)   f32 batch tile
    wN    : (in, out)  bf16, zero-padded to lane-aligned widths
    b1,b2 : (1, out)   f32 or bf16 -- their dtype sets the hidden elementwise dtype
    b3    : (1, Ap)    f32
    ma    : (1, 1)     f32 scalar in SMEM
    o_ref : (TB, Ap)
    """
    # layer 1: MXU (bf16 inputs, f32 accumulation), bias+ReLU in the bias dtype
    b1 = b1_ref[...]
    h1 = jnp.dot(x_ref[...].astype(jnp.bfloat16), w1_ref[...],
                 preferred_element_type=jnp.float32)
    h1 = jnp.maximum(h1.astype(b1.dtype) + b1, 0.0)

    # layer 2
    b2 = b2_ref[...]
    h2 = jnp.dot(h1.astype(jnp.bfloat16), w2_ref[...],
                 preferred_element_type=jnp.float32)
    h2 = jnp.maximum(h2.astype(b2.dtype) + b2, 0.0)

    # layer 3: bias + tanh in f32 (tanh goes to the EUP slot), scale by max_action
    h3 = jnp.dot(h2.astype(jnp.bfloat16), w3_ref[...],
                 preferred_element_type=jnp.float32)
    h3 = h3 + b3_ref[...]
    o_ref[...] = (ma_ref[0, 0] * jnp.tanh(h3)).astype(o_ref.dtype)


# ---------------------------------------------------------------------------
# One-time parameter preparation (hoisted out of the forward hot path)
# ---------------------------------------------------------------------------
def _round_up(x, m):
    return ((x + m - 1) // m) * m


def _hidden_elementwise_dtype():
    """bf16 bias/ReLU chain on chips with a bf16 VPU (v6e/v7x); f32 elsewhere."""
    try:
        kind = jax.devices()[0].device_kind.lower()
    except Exception:
        return jnp.float32
    if ("v6" in kind) or ("v7" in kind):
        return jnp.bfloat16
    return jnp.float32


def prepare_params(params, weights_dtype=jnp.bfloat16, hidden_bias_dtype=None):
    """Convert PyTorch-layout params to kernel layout. Do this ONCE at load.

    - transpose weights to (in_features, out_features)
    - zero-pad out dims to 128 lanes (in dims to 8 sublanes; state_dim is NOT
      padded to 128 -- that would only add wasted layer-1 MXU flops)
    - cast weights to bf16 (MXU-native, half the HBM->VMEM bytes)
    - biases b1/b2 in bf16 on v6e/v7x (bf16 VPU) or f32 on v5e; b3 stays f32.
    Zero-padded weight columns + zero biases keep padded lanes exactly 0 through
    ReLU/tanh, so slicing the output back off is exact.
    """
    if hidden_bias_dtype is None:
        hidden_bias_dtype = _hidden_elementwise_dtype()

    S = params["w1"].shape[1]
    H1 = params["w1"].shape[0]
    H2 = params["w2"].shape[0]
    A = params["w3"].shape[0]

    Sp = _round_up(S, 8)
    H1p = _round_up(H1, 128)
    H2p = _round_up(H2, 128)
    Ap = _round_up(A, 128)

    def pad_to(x, shape):
        return jnp.pad(x, [(0, t - s) for s, t in zip(x.shape, shape)])

    return {
        "w1": pad_to(params["w1"].T, (Sp, H1p)).astype(weights_dtype),
        "b1": pad_to(params["b1"][None, :], (1, H1p)).astype(hidden_bias_dtype),
        "w2": pad_to(params["w2"].T, (H1p, H2p)).astype(weights_dtype),
        "b2": pad_to(params["b2"][None, :], (1, H2p)).astype(hidden_bias_dtype),
        "w3": pad_to(params["w3"].T, (H2p, Ap)).astype(weights_dtype),
        "b3": pad_to(params["b3"][None, :], (1, Ap)).astype(jnp.float32),
    }


# ---------------------------------------------------------------------------
# Batch tile selection (static, runs at trace time)
# ---------------------------------------------------------------------------
def _choose_batch_tile(B, max_tile):
    """Pick (TB, n_steps): TB multiple of 16 (or B rounded to 8 for a single
    step), minimal batch padding, and an even step count when >1 so both v7x
    TensorCores stay busy."""
    B8 = _round_up(B, 8)
    max_tile = max(16, _round_up(int(max_tile), 16))
    if B8 <= max_tile:
        return B8, 1                      # one step; only 8-row alignment padding
    n = pl.cdiv(B8, max_tile)
    if n % 2:
        n += 1                            # even -> both v7x cores get work
    TB = _round_up(pl.cdiv(B8, n), 16)
    n = pl.cdiv(B8, TB)
    return TB, n


# ---------------------------------------------------------------------------
# Forward (one fused, jitted dispatch: pad -> pallas_call -> slice)
# ---------------------------------------------------------------------------
@functools.partial(jax.jit, static_argnames=("action_dim", "tile_batch", "out_dtype"))
def qnetwork_forward(state, prepared, max_action, action_dim, tile_batch=1024,
                     out_dtype=jnp.float32):
    """state: (B, state_dim) f32; prepared: dict from prepare_params();
    max_action: scalar (traced, no recompile per value)."""
    B, S = state.shape
    Sp, H1p = prepared["w1"].shape
    H2p = prepared["w2"].shape[1]
    Ap = prepared["w3"].shape[1]

    TB, n_steps = _choose_batch_tile(B, tile_batch)
    Bp = TB * n_steps
    if (Bp, Sp) != (B, S):
        state_p = jnp.pad(state, ((0, Bp - B), (0, Sp - S)))
    else:
        state_p = state

    ma = jnp.full((1, 1), max_action, dtype=jnp.float32)

    weight_bytes = sum(int(prepared[k].size) * prepared[k].dtype.itemsize
                       for k in ("w1", "w2", "w3", "b1", "b2", "b3"))
    cost = pl.CostEstimate(
        flops=2 * Bp * (Sp * H1p + H1p * H2p + H2p * Ap),
        transcendentals=Bp * Ap,
        bytes_accessed=weight_bytes + Bp * Sp * 4
        + Bp * Ap * jnp.dtype(out_dtype).itemsize,
    )

    out_p = pl.pallas_call(
        _qnet_kernel,
        out_shape=jax.ShapeDtypeStruct((Bp, Ap), out_dtype),
        grid=(n_steps,),
        in_specs=[
            # max_action scalar in SMEM (full array every step)
            pl.BlockSpec(memory_space=pltpu.MemorySpace.SMEM),
            # batch tile of the state
            pl.BlockSpec((TB, Sp), lambda i: (i, 0)),
            # weights / biases: constant index_maps -> VMEM-resident across steps
            pl.BlockSpec((Sp, H1p), lambda i: (0, 0)),
            pl.BlockSpec((1, H1p), lambda i: (0, 0)),
            pl.BlockSpec((H1p, H2p), lambda i: (0, 0)),
            pl.BlockSpec((1, H2p), lambda i: (0, 0)),
            pl.BlockSpec((H2p, Ap), lambda i: (0, 0)),
            pl.BlockSpec((1, Ap), lambda i: (0, 0)),
        ],
        out_specs=pl.BlockSpec((TB, Ap), lambda i: (i, 0)),
        compiler_params=pltpu.CompilerParams(
            dimension_semantics=("parallel",)),   # batch tiles shard on v7x's 2 TCs
        cost_estimate=cost,
    )(ma, state_p, prepared["w1"], prepared["b1"], prepared["w2"],
      prepared["b2"], prepared["w3"], prepared["b3"])

    return out_p[:B, :action_dim].astype(jnp.float32)


# ---------------------------------------------------------------------------
# Synthetic init (PyTorch nn.Linear shapes / init ranges)
# ---------------------------------------------------------------------------
def init_params(key, state_dim, action_dim):
    ks = jax.random.split(key, 6)

    def lin(kw, kb, fan_in, fan_out):
        bound = 1.0 / jnp.sqrt(fan_in)
        w = jax.random.uniform(kw, (fan_out, fan_in), jnp.float32, -bound, bound)
        b = jax.random.uniform(kb, (fan_out,), jnp.float32, -bound, bound)
        return w, b

    w1, b1 = lin(ks[0], ks[1], state_dim, 400)
    w2, b2 = lin(ks[2], ks[3], 400, 300)
    w3, b3 = lin(ks[4], ks[5], 300, action_dim)
    return {"w1": w1, "b1": b1, "w2": w2, "b2": b2, "w3": w3, "b3": b3}


if __name__ == "__main__":
    key = jax.random.PRNGKey(0)
    k_params, k_state = jax.random.split(key)

    batch = 8
    state_dim = 16
    action_dim = 4
    max_action = 2.0

    params = init_params(k_params, state_dim, action_dim)
    prepared = prepare_params(params)          # one-time: transpose / pad / bf16
    state = jax.random.normal(k_state, (batch, state_dim), jnp.float32)

    out = qnetwork_forward(state, prepared, max_action, action_dim)
    out = jax.block_until_ready(out)

    # Pure-JAX f32 reference of the same math (bf16 MXU inputs => relaxed tol).
    ref = jnp.maximum(state @ params["w1"].T + params["b1"], 0.0)
    ref = jnp.maximum(ref @ params["w2"].T + params["b2"], 0.0)
    ref = max_action * jnp.tanh(ref @ params["w3"].T + params["b3"])

    assert out.shape == (batch, action_dim)
    err = float(jnp.max(jnp.abs(out - ref)))
    assert jnp.allclose(out, ref, atol=3e-2, rtol=3e-2), f"max abs err {err}"

    print("KERNEL_OK")
</pallas_src>

<mosaic_0001>
module attributes {stable_mosaic.version = 11 : i64} {
  func.func @_qnet_kernel(%arg0: i32, %arg1: memref<1x1xf32, #tpu.memory_space<smem>>, %arg2: memref<8x16xf32, #tpu.memory_space<vmem>>, %arg3: memref<16x512xbf16, #tpu.memory_space<vmem>>, %arg4: memref<1x512xf32, #tpu.memory_space<vmem>>, %arg5: memref<512x384xbf16, #tpu.memory_space<vmem>>, %arg6: memref<1x384xf32, #tpu.memory_space<vmem>>, %arg7: memref<384x128xbf16, #tpu.memory_space<vmem>>, %arg8: memref<1x128xf32, #tpu.memory_space<vmem>>, %arg9: memref<8x128xf32, #tpu.memory_space<vmem>>) attributes {dimension_semantics = [#tpu.dimension_semantics<parallel>], iteration_bounds = array<i64: 1>, scalar_prefetch = 0 : i64, scratch_operands = 0 : i64, tpu.core_type = #tpu.core_type<tc>, window_params = [{transform_indices = @transform_0, window_bounds = array<i64: 1, 1>}, {transform_indices = @transform_1, window_bounds = array<i64: 8, 16>}, {pipeline_mode = #tpu.pipeline_mode<synchronous>, transform_indices = @transform_2, window_bounds = array<i64: 16, 512>}, {pipeline_mode = #tpu.pipeline_mode<synchronous>, transform_indices = @transform_3, window_bounds = array<i64: 1, 512>}, {pipeline_mode = #tpu.pipeline_mode<synchronous>, transform_indices = @transform_4, window_bounds = array<i64: 512, 384>}, {pipeline_mode = #tpu.pipeline_mode<synchronous>, transform_indices = @transform_5, window_bounds = array<i64: 1, 384>}, {pipeline_mode = #tpu.pipeline_mode<synchronous>, transform_indices = @transform_6, window_bounds = array<i64: 384, 128>}, {pipeline_mode = #tpu.pipeline_mode<synchronous>, transform_indices = @transform_7, window_bounds = array<i64: 1, 128>}, {transform_indices = @transform_8, window_bounds = array<i64: 8, 128>}]} {
    %c0 = arith.constant 0 : index
    %c0_0 = arith.constant 0 : index
    %0 = vector.load %arg4[%c0, %c0_0] : memref<1x512xf32, #tpu.memory_space<vmem>>, vector<1x512xf32>
    %c0_1 = arith.constant 0 : index
    %c0_2 = arith.constant 0 : index
    %1 = vector.load %arg2[%c0_1, %c0_2] : memref<8x16xf32, #tpu.memory_space<vmem>>, vector<8x16xf32>
    %2 = arith.truncf %1 : vector<8x16xf32> to vector<8x16xbf16>
    %c0_3 = arith.constant 0 : index
    %c0_4 = arith.constant 0 : index
    %3 = vector.load %arg3[%c0_3, %c0_4] : memref<16x512xbf16, #tpu.memory_space<vmem>>, vector<16x512xbf16>
    %cst = arith.constant dense<0.000000e+00> : vector<8x512xf32>
    %4 = tpu.matmul %2, %3, %cst {dimension_numbers = #tpu.dot_dimension_numbers<[1], [0], [0], [1], [0, 0, 1, 1], [], []>} : vector<8x16xbf16>, vector<16x512xbf16>, vector<8x512xf32> -> vector<8x512xf32>
    %5 = vector.broadcast %0 : vector<1x512xf32> to vector<8x512xf32>
    %6 = arith.addf %4, %5 : vector<8x512xf32>
    %cst_5 = arith.constant 0.000000e+00 : f32
    %7 = vector.broadcast %cst_5 : f32 to vector<8x512xf32>
    %8 = arith.maximumf %6, %7 : vector<8x512xf32>
    %c0_6 = arith.constant 0 : index
    %c0_7 = arith.constant 0 : index
    %9 = vector.load %arg6[%c0_6, %c0_7] : memref<1x384xf32, #tpu.memory_space<vmem>>, vector<1x384xf32>
    %10 = arith.truncf %8 : vector<8x512xf32> to vector<8x512xbf16>
    %c0_8 = arith.constant 0 : index
    %c0_9 = arith.constant 0 : index
    %11 = vector.load %arg5[%c0_8, %c0_9] : memref<512x384xbf16, #tpu.memory_space<vmem>>, vector<512x384xbf16>
    %cst_10 = arith.constant dense<0.000000e+00> : vector<8x384xf32>
    %12 = tpu.matmul %10, %11, %cst_10 {dimension_numbers = #tpu.dot_dimension_numbers<[1], [0], [0], [1], [0, 0, 1, 1], [], []>} : vector<8x512xbf16>, vector<512x384xbf16>, vector<8x384xf32> -> vector<8x384xf32>
    %13 = vector.broadcast %9 : vector<1x384xf32> to vector<8x384xf32>
    %14 = arith.addf %12, %13 : vector<8x384xf32>
    %cst_11 = arith.constant 0.000000e+00 : f32
    %15 = vector.broadcast %cst_11 : f32 to vector<8x384xf32>
    %16 = arith.maximumf %14, %15 : vector<8x384xf32>
    %17 = arith.truncf %16 : vector<8x384xf32> to vector<8x384xbf16>
    %c0_12 = arith.constant 0 : index
    %c0_13 = arith.constant 0 : index
    %18 = vector.load %arg7[%c0_12, %c0_13] : memref<384x128xbf16, #tpu.memory_space<vmem>>, vector<384x128xbf16>
    %cst_14 = arith.constant dense<0.000000e+00> : vector<8x128xf32>
    %19 = tpu.matmul %17, %18, %cst_14 {dimension_numbers = #tpu.dot_dimension_numbers<[1], [0], [0], [1], [0, 0, 1, 1], [], []>} : vector<8x384xbf16>, vector<384x128xbf16>, vector<8x128xf32> -> vector<8x128xf32>
    %c0_15 = arith.constant 0 : index
    %c0_16 = arith.constant 0 : index
    %20 = vector.load %arg8[%c0_15, %c0_16] : memref<1x128xf32, #tpu.memory_space<vmem>>, vector<1x128xf32>
    %21 = vector.broadcast %20 : vector<1x128xf32> to vector<8x128xf32>
    %22 = arith.addf %19, %21 : vector<8x128xf32>
    %c0_17 = arith.constant 0 : index
    %c0_18 = arith.constant 0 : index
    %23 = memref.load %arg1[%c0_17, %c0_18] : memref<1x1xf32, #tpu.memory_space<smem>>
    %24 = math.tanh %22 : vector<8x128xf32>
    %25 = vector.broadcast %23 : f32 to vector<8x128xf32>
    %26 = arith.mulf %25, %24 : vector<8x128xf32>
    %c0_19 = arith.constant 0 : index
    %c0_20 = arith.constant 0 : index
    %27 = vector.load %arg9[%c0_19, %c0_20] : memref<8x128xf32, #tpu.memory_space<vmem>>, vector<8x128xf32>
    tpu.vector_store %arg9[%c0_19, %c0_20], %26 {strides = array<i32>} : memref<8x128xf32, #tpu.memory_space<vmem>>, vector<8x128xf32>,
    return
  }
  func.func @transform_0(%arg0: i32) -> (i32, i32) {
    %c0_i32 = arith.constant 0 : i32
    %c0_i32_0 = arith.constant 0 : i32
    %c0_i32_1 = arith.constant 0 : i32
    return %c0_i32, %c0_i32_0 : i32, i32
  }
  func.func @transform_1(%arg0: i32) -> (i32, i32) {
    %c0_i32 = arith.constant 0 : i32
    %c0_i32_0 = arith.constant 0 : i32
    return %arg0, %c0_i32 : i32, i32
  }
  func.func @transform_2(%arg0: i32) -> (i32, i32) {
    %c0_i32 = arith.constant 0 : i32
    %c0_i32_0 = arith.constant 0 : i32
    %c0_i32_1 = arith.constant 0 : i32
    return %c0_i32, %c0_i32_0 : i32, i32
  }
  func.func @transform_3(%arg0: i32) -> (i32, i32) {
    %c0_i32 = arith.constant 0 : i32
    %c0_i32_0 = arith.constant 0 : i32
    %c0_i32_1 = arith.constant 0 : i32
    return %c0_i32, %c0_i32_0 : i32, i32
  }
  func.func @transform_4(%arg0: i32) -> (i32, i32) {
    %c0_i32 = arith.constant 0 : i32
    %c0_i32_0 = arith.constant 0 : i32
    %c0_i32_1 = arith.constant 0 : i32
    return %c0_i32, %c0_i32_0 : i32, i32
  }
  func.func @transform_5(%arg0: i32) -> (i32, i32) {
    %c0_i32 = arith.constant 0 : i32
    %c0_i32_0 = arith.constant 0 : i32
    %c0_i32_1 = arith.constant 0 : i32
    return %c0_i32, %c0_i32_0 : i32, i32
  }
  func.func @transform_6(%arg0: i32) -> (i32, i32) {
    %c0_i32 = arith.constant 0 : i32
    %c0_i32_0 = arith.constant 0 : i32
    %c0_i32_1 = arith.constant 0 : i32
    return %c0_i32, %c0_i32_0 : i32, i32
  }
  func.func @transform_7(%arg0: i32) -> (i32, i32) {
    %c0_i32 = arith.constant 0 : i32
    %c0_i32_0 = arith.constant 0 : i32
    %c0_i32_1 = arith.constant 0 : i32
    return %c0_i32, %c0_i32_0 : i32, i32
  }
  func.func @transform_8(%arg0: i32) -> (i32, i32) {
    %c0_i32 = arith.constant 0 : i32
    %c0_i32_0 = arith.constant 0 : i32
    return %arg0, %c0_i32 : i32, i32
  }
}

</mosaic_0001>

<bundles_post_ra>
// kernel: qnetwork_forward.1
= control target key start
LH: loop header
LB: loop body
LE: loop exit
PB: predicated region body
PF: predicated region fallthrough
CT: control target
= control target key end

     0   :  { %14 = vsyncpa [#allocation4], 0  ;;  %s1985_s0 = inlined_call_operand.<no memory space> [shape: f32[1,1], index: 0, kind: input, shape index: {}]   ;;  %s1986_s1 = inlined_call_operand.hbm [shape: f32[8,16], index: 1, kind: input, shape index: {}]   ;;  %s1987_s2 = inlined_call_operand.hbm [shape: bf16[16,512], index: 2, kind: input, shape index: {}]   ;;  %s1988_s3 = inlined_call_operand.vmem [shape: f32[1,512], index: 3, kind: input, shape index: {}]   ;;  %s1989_s4 = inlined_call_operand.hbm [shape: bf16[512,384], index: 4, kind: input, shape index: {}]   ;;  %s1990_s5 = inlined_call_operand.vmem [shape: f32[1,384], index: 5, kind: input, shape index: {}]   ;;  %s1991_s6 = inlined_call_operand.hbm [shape: bf16[384,128], index: 6, kind: input, shape index: {}]   ;;  %s1992_s7 = inlined_call_operand.vmem [shape: f32[1,128], index: 7, kind: input, shape index: {}]   ;;  %s1993_s8 = inlined_call_operand.vmem [shape: f32[8,128], index: 8, kind: output, shape index: {}]  }
   0x1   :  { %15 = vsyncpa [#allocation6], 0 }
   0x2   :  { %16 = vsyncpa [#allocation9], 0  ;;  %s1837_s27 = smov [#allocation5]   ;;  %s1743_s9 = scalar_lea.hbm %s1987_s2, 512 }
   0x3   :  { %s34_s28 = sshll.u32 %s1837_s27, 4  ;;  %p1744_p0 = scmp.ne.s32.totalorder %s1987_s2, %s1743_s9  ;;  %s35_s28 = int_to_ptr.vmem [resolvable:$true] %s34_s28 }
   0x4   :  { %p1747_p1 = scmp.lt.u32.totalorder %s1743_s9, %s1987_s2 }
   0x6   :  { %p1749_p2 = pnand %p1747_p1, %p1744_p0 }
   0x8   :  { %1752 = shalt.err (!%p1749_p2)
}
   0x9   :  { %s1753_s14 = scalar_lea.vmem %s35_s28, 512  ;;  %p1758_p4 = scmp.lt.s32.totalorder %s35_s28, %s35_s28 }
   0xa   :  { %p1754_p3 = scmp.ne.s32.totalorder %s35_s28, %s1753_s14  ;;  %p1759_p5 = scmp.lt.s32.totalorder %s1753_s14, %s1753_s14 }
   0xc   :  { %p1760_p6 = por %p1759_p5, %p1758_p4 }
   0xe   :  { %p1761_p7 = pnand %p1760_p6, %p1754_p3 }
  0x10   :  { %1764 = shalt.err (!%p1761_p7)
}
  0x11   :  { %s1838_s15 = smov 256   ;;  %s1839_s16 = smov 16  }
  0x12   :  { %40 = dma.hbm_to_vmem [thread:$0]  %s1987_s2, 512, %s35_s28, [#allocation6], %s1838_s15, %s1838_s15, %s1839_s16  }
  0x13   :  { %s1840_s19 = smov [#allocation3]   ;;  %s1841_s21 = smov [#allocation7]  }
  0x14   :  { %s25_s20 = sshll.u32 %s1840_s19, 4  ;;  %s48_s22 = sshll.u32 %s1841_s21, 4  ;;  %s26_s20 = int_to_ptr.vmem [resolvable:$true] %s25_s20  ;;  %s49_s22 = int_to_ptr.vmem [resolvable:$true] %s48_s22 }
  0x15   :  { %s1765_s25 = scalar_lea.hbm %s1986_s1, 128 }
  0x16   :  { %p1766_p8 = scmp.ne.s32.totalorder %s1986_s1, %s1765_s25  ;;  %p1769_p9 = scmp.lt.u32.totalorder %s1765_s25, %s1986_s1 }
  0x18   :  { %p1771_p10 = pnand %p1769_p9, %p1766_p8 }
  0x1a   :  { %1774 = shalt.err (!%p1771_p10)
}
  0x1b   :  { %s1775_s2 = scalar_lea.vmem %s26_s20, 128  ;;  %p1780_p12 = scmp.lt.s32.totalorder %s26_s20, %s26_s20 }
  0x1c   :  { %p1776_p11 = scmp.ne.s32.totalorder %s26_s20, %s1775_s2  ;;  %p1781_p13 = scmp.lt.s32.totalorder %s1775_s2, %s1775_s2 }
  0x1e   :  { %p1782_p0 = por %p1781_p13, %p1780_p12 }
  0x20   :  { %p1783_p1 = pnand %p1782_p0, %p1776_p11 }
  0x22   :  { %1786 = shalt.err (!%p1783_p1)
}
  0x23   :  { %28 = dma.hbm_to_vmem [thread:$0]  %s1986_s1, 128, %s26_s20, [#allocation4]  }
  0x24   :  { %s1787_s12 = scalar_lea.hbm %s1989_s4, 12288 }
  0x25   :  { %p1788_p2 = scmp.ne.s32.totalorder %s1989_s4, %s1787_s12  ;;  %p1791_p3 = scmp.lt.u32.totalorder %s1787_s12, %s1989_s4 }
  0x27   :  { %p1793_p4 = pnand %p1791_p3, %p1788_p2 }
  0x29   :  { %1796 = shalt.err (!%p1793_p4)
}
  0x2a   :  { %s1797_s17 = scalar_lea.vmem %s49_s22, 12288  ;;  %p1802_p6 = scmp.lt.s32.totalorder %s49_s22, %s49_s22 }
  0x2b   :  { %p1798_p5 = scmp.ne.s32.totalorder %s49_s22, %s1797_s17  ;;  %p1803_p7 = scmp.lt.s32.totalorder %s1797_s17, %s1797_s17 }
  0x2d   :  { %p1804_p8 = por %p1803_p7, %p1802_p6 }
  0x2f   :  { %p1805_p9 = pnand %p1804_p8, %p1798_p5 }
  0x31   :  { %1808 = shalt.err (!%p1805_p9)
}
  0x32   :  { %s1842_s1 = smov 192   ;;  %s1843_s18 = smov 12  }
  0x33   :  { %54 = dma.hbm_to_vmem [thread:$0]  %s1989_s4, 12288, %s49_s22, [#allocation6], %s1842_s1, %s1842_s1, %s1843_s18  }
  0x34   :  { %s1844_s21 = smov [#allocation8]   ;;  %s1809_s26 = scalar_lea.hbm %s1991_s6, 3072 }
  0x35   :  { %s62_s23 = sshll.u32 %s1844_s21, 4  ;;  %p1810_p10 = scmp.ne.s32.totalorder %s1991_s6, %s1809_s26  ;;  %s63_s23 = int_to_ptr.vmem [resolvable:$true] %s62_s23 }
  0x36   :  { %p1813_p11 = scmp.lt.u32.totalorder %s1809_s26, %s1991_s6 }
  0x38   :  { %p1815_p12 = pnand %p1813_p11, %p1810_p10 }
  0x3a   :  { %1818 = shalt.err (!%p1815_p12)
}
  0x3b   :  { %s1819_s28 = scalar_lea.vmem %s63_s23, 3072  ;;  %p1824_p0 = scmp.lt.s32.totalorder %s63_s23, %s63_s23 }
  0x3c   :  { %p1820_p13 = scmp.ne.s32.totalorder %s63_s23, %s1819_s28  ;;  %p1825_p1 = scmp.lt.s32.totalorder %s1819_s28, %s1819_s28 }
  0x3e   :  { %p1826_p2 = por %p1825_p1, %p1824_p0 }
  0x40   :  { %p1827_p3 = pnand %p1826_p2, %p1820_p13 }
  0x42   :  { %1830 = shalt.err (!%p1827_p3)
}
  0x43   :  { %s1845_s4 = smov 64   ;;  %s1846_s22 = smov 4  }
  0x44   :  { %68 = dma.hbm_to_vmem [thread:$0]  %s1991_s6, 3072, %s63_s23, [#allocation9], %s1845_s4, %s1845_s4, %s1846_s22  }
  0x45   :  { %1831 = dma.done.wait [#allocation4], 128  }
  0x46   :  { %1832 = vsyncadd [#allocation4], 4294967168 }
  0x47   :  { %1833 = dma.done.wait [#allocation6], 12800  }
  0x48   :  { %1834 = vsyncadd [#allocation6], 4294954496 }
  0x49   :  { %1835 = dma.done.wait [#allocation9], 3072  }
  0x4a   :  { %1836 = vsyncadd [#allocation9], 4294964224  ;;  %v1847_v0 = vmov 0   ;;  %v1583_v1 = vld [vmem:[#allocation5 + $0x4] ss:$16 sps:$4 sm:$0xff]   ;;  %v85_v3 = vld [vmem:[#allocation3] sm:$0xff]  ;;  %v92_v57 = vlaneseq }
  0x4b   :  { %168 = vmatprep.mubr.bf16.mxu0 %v1847_v0  ;;  %209 = vmatprep.mubr.bf16.mxu1 %v1847_v0  ;;  %v1585_v2 = vld [vmem:[#allocation5] ss:$16 sps:$4 sm:$0xff]   ;;  %v86_v4 = vpack.c.bf16 %v85_v3, %v85_v3  ;;  %v1586_v5 = vld [vmem:[#allocation5 + $0xc] ss:$16 sps:$4 sm:$0xff]   ;;  %v1588_v6 = vld [vmem:[#allocation5 + $0x8] ss:$16 sps:$4 sm:$0xff]  }
  0x4c   :  { %136 = vmatprep.subr.bf16.mxu0 %v1583_v1  ;;  %vm132_vm0 = vcmask 130048   ;;  %v1589_v7 = vld [vmem:[#allocation7] ss:$12 sps:$4 sm:$0xff]   ;;  %177 = vmatprep.subr.bf16.mxu1 %v1586_v5  ;;  %v1591_v8 = vld [vmem:[#allocation7 + $0x4] ss:$12 sps:$4 sm:$0xff]   ;;  %v1943_v58 = vshrl.u32 %v92_v57, 7 }
  0x4d   :  { %137 = vmatpush1.bf16.msra.mxu0 %v1585_v2  ;;  %178 = vmatpush1.bf16.msra.mxu1 %v1588_v6  ;;  %v1594_v9 = vld [vmem:[#allocation7 + $0x1c] ss:$12 sps:$4 sm:$0xff]   ;;  %v1592_v10 = vld [vmem:[#allocation7 + $0x18] ss:$12 sps:$4 sm:$0xff]   ;;  %v1597_v11 = vld [vmem:[#allocation7 + $0x34] ss:$12 sps:$4 sm:$0xff]  }
  0x4e   :  { %883 = vmatprep.subr.bf16.mxu0 %v1591_v8  ;;  %v1595_v12 = vld [vmem:[#allocation7 + $0x30] ss:$12 sps:$4 sm:$0xff]   ;;  %v1600_v13 = vld [vmem:[#allocation7 + $0x4c] ss:$12 sps:$4 sm:$0xff]   ;;  %v1598_v14 = vld [vmem:[#allocation7 + $0x48] ss:$12 sps:$4 sm:$0xff]  }
  0x4f   :  { %v1603_v15 = vld [vmem:[#allocation7 + $0x64] ss:$12 sps:$4 sm:$0xff]   ;;  %v1616_v16 = vld [vmem:[#allocation7 + $0xc8] ss:$12 sps:$4 sm:$0xff]   ;;  %v1601_v18 = vld [vmem:[#allocation7 + $0x60] ss:$12 sps:$4 sm:$0xff]  }
  0x50   :  { %1346 = vmatmul.mubr.msk.bf16.vlgmr.msra.gmra.mrb[0].mxu0 %vm132_vm0, %v86_v4  ;;  %1347 = vmatmul.mubr.msk.bf16.vlgmr.msra.gmra.mrb[0].mxu1 %vm132_vm0, %v86_v4  ;;  %v1617_v17 = vld [vmem:[#allocation7 + $0x8] ss:$12 sps:$4 sm:$0xff]   ;;  %v1621_v20 = vld [vmem:[#allocation7 + $0xe0] ss:$12 sps:$4 sm:$0xff]   ;;  %v1604_v22 = vld [vmem:[#allocation7 + $0x78] ss:$12 sps:$4 sm:$0xff]  }
  0x51   :  { %884 = vmatpush1.bf16.msra.mxu0 %v1589_v7  ;;  %1469 = vmatprep.subr.bf16.mxu1 %v1616_v16  ;;  %v1606_v19 = vld [vmem:[#allocation7 + $0x7c] ss:$12 sps:$4 sm:$0xff]   ;;  %v1622_v21 = vld [vmem:[#allocation7 + $0x20] ss:$12 sps:$4 sm:$0xff]   ;;  %v1626_v23 = vld [vmem:[#allocation7 + $0xf8] ss:$12 sps:$4 sm:$0xff]  }
  0x52   :  { %885 = vmatprep.subr.bf16.mxu0 %v1594_v9  ;;  %1470 = vmatpush3.bf16.msra.mxu1 %v1617_v17  ;;  %v1627_v24 = vld [vmem:[#allocation7 + $0x38] ss:$12 sps:$4 sm:$0xff]   ;;  %v1609_v25 = vld [vmem:[#allocation7 + $0x94] ss:$12 sps:$4 sm:$0xff]   ;;  %v1631_v26 = vld [vmem:[#allocation7 + $0x110] ss:$12 sps:$4 sm:$0xff]  }
  0x53   :  { %1471 = vmatprep.subr.bf16.mxu1 %v1621_v20  ;;  %v1632_v27 = vld [vmem:[#allocation7 + $0x50] ss:$12 sps:$4 sm:$0xff]   ;;  %v1612_v29 = vld [vmem:[#allocation7 + $0xac] ss:$12 sps:$4 sm:$0xff]   ;;  %v1636_v30 = vld [vmem:[#allocation7 + $0x128] ss:$12 sps:$4 sm:$0xff]  }
  0x54   :  { %v1607_v28 = vld [vmem:[#allocation7 + $0x90] ss:$12 sps:$4 sm:$0xff]   ;;  %v1637_v31 = vld [vmem:[#allocation7 + $0x68] ss:$12 sps:$4 sm:$0xff]   ;;  %v1641_v34 = vld [vmem:[#allocation7 + $0x140] ss:$12 sps:$4 sm:$0xff]  }
  0x55   :  { %886 = vmatpush1.bf16.msra.mxu0 %v1592_v10  ;;  %v1610_v32 = vld [vmem:[#allocation7 + $0xa8] ss:$12 sps:$4 sm:$0xff]   ;;  %v1615_v33 = vld [vmem:[#allocation7 + $0xc4] ss:$12 sps:$4 sm:$0xff]   ;;  %v1613_v35 = vld [vmem:[#allocation7 + $0xc0] ss:$12 sps:$4 sm:$0xff]  }
  0x56   :  { %887 = vmatprep.subr.bf16.mxu0 %v1597_v11  ;;  %1472 = vmatpush3.bf16.msra.mxu1 %v1622_v21  ;;  %v1642_v36 = vld [vmem:[#allocation7 + $0x80] ss:$12 sps:$4 sm:$0xff]   ;;  %v1620_v37 = vld [vmem:[#allocation7 + $0xdc] ss:$12 sps:$4 sm:$0xff]   ;;  %v1618_v38 = vld [vmem:[#allocation7 + $0xd8] ss:$12 sps:$4 sm:$0xff]  }
  0x57   :  { %1473 = vmatprep.subr.bf16.mxu1 %v1626_v23  ;;  %v1625_v39 = vld [vmem:[#allocation7 + $0xf4] ss:$12 sps:$4 sm:$0xff]   ;;  %v1623_v40 = vld [vmem:[#allocation7 + $0xf0] ss:$12 sps:$4 sm:$0xff]   ;;  %v1630_v41 = vld [vmem:[#allocation7 + $0x10c] ss:$12 sps:$4 sm:$0xff]  }
  0x58   :  { %v1628_v42 = vld [vmem:[#allocation7 + $0x108] ss:$12 sps:$4 sm:$0xff]   ;;  %v1635_v43 = vld [vmem:[#allocation7 + $0x124] ss:$12 sps:$4 sm:$0xff]   ;;  %v1633_v44 = vld [vmem:[#allocation7 + $0x120] ss:$12 sps:$4 sm:$0xff]  }
  0x59   :  { %888 = vmatpush1.bf16.msra.mxu0 %v1595_v12  ;;  %v1640_v45 = vld [vmem:[#allocation7 + $0x13c] ss:$12 sps:$4 sm:$0xff]   ;;  %v1638_v46 = vld [vmem:[#allocation7 + $0x138] ss:$12 sps:$4 sm:$0xff]   ;;  %v1645_v47 = vld [vmem:[#allocation7 + $0x154] ss:$12 sps:$4 sm:$0xff]  }
  0x5a   :  { %889 = vmatprep.subr.bf16.mxu0 %v1600_v13  ;;  %1474 = vmatpush3.bf16.msra.mxu1 %v1627_v24  ;;  %v1646_v48 = vld [vmem:[#allocation7 + $0x158] ss:$12 sps:$4 sm:$0xff]   ;;  %v1643_v49 = vld [vmem:[#allocation7 + $0x150] ss:$12 sps:$4 sm:$0xff]   ;;  %v1648_v53 = vld [vmem:[#allocation7 + $0x168] ss:$12 sps:$4 sm:$0xff]  }
  0x5b   :  { %1475 = vmatprep.subr.bf16.mxu1 %v1631_v26  ;;  %v1647_v50 = vld [vmem:[#allocation7 + $0x98] ss:$12 sps:$4 sm:$0xff]   ;;  %v1651_v52 = vld [vmem:[#allocation7 + $0x170] ss:$12 sps:$4 sm:$0xff]   ;;  %v1656_v56 = vld [vmem:[#allocation7 + $0x248] ss:$12 sps:$4 sm:$0xff]  }
  0x5c   :  { %v1650_v51 = vld [vmem:[#allocation7 + $0x16c] ss:$12 sps:$4 sm:$0xff]   ;;  %v1652_v54 = vld [vmem:[#allocation7 + $0xb0] ss:$12 sps:$4 sm:$0xff]   ;;  %v94_v59 = vsub.s32 0, %v1943_v58  ;;  %v98_v61 = vsub.s32 1, %v1943_v58 }
  0x5d   :  { %890 = vmatpush1.bf16.msra.mxu0 %v1598_v14  ;;  %v1655_v55 = vld [vmem:[#allocation7 + $0x184] ss:$12 sps:$4 sm:$0xff]   ;;  %v1949_v60 = vld [vmem:[%s1988_s3] sm:$0xf]  ;;  %v106_v62 = vsub.s32 3, %v1943_v58  ;;  %vm1849_vm1 = vmmov 0  }
  0x5e   :  { %891 = vmatprep.subr.bf16.mxu0 %v1603_v15  ;;  %1476 = vmatpush3.bf16.msra.mxu1 %v1632_v27  ;;  %v95_v63 = vrot.slane %v1949_v60, %v94_v59  ;;  %v99_v0 = vrot.slane %v1949_v60, %v98_v61  ;;  %v1653_v16 = vld [vmem:[#allocation7 + $0x180] ss:$12 sps:$4 sm:$0xff]   ;;  %v1657_v17 = vld [vmem:[#allocation7 + $0x188] ss:$12 sps:$4 sm:$0xff]   ;;  %v1658_v23 = vld [vmem:[#allocation7 + $0x198] ss:$12 sps:$4 sm:$0xff]  }
  0x5f   :  { %1477 = vmatprep.subr.bf16.mxu1 %v1636_v30  ;;  %v107_v2 = vrot.slane %v1949_v60, %v106_v62  ;;  %v1660_v20 = vld [vmem:[#allocation7 + $0x19c] ss:$12 sps:$4 sm:$0xff]   ;;  %v1661_v21 = vld [vmem:[#allocation7 + $0x260] ss:$12 sps:$4 sm:$0xff]   ;;  %v1666_v26 = vld [vmem:[#allocation7 + $0x278] ss:$12 sps:$4 sm:$0xff]  }
  0x60   :  { %v1662_v24 = vld [vmem:[#allocation7 + $0x1a0] ss:$12 sps:$4 sm:$0xff]   ;;  %v1663_v27 = vld [vmem:[#allocation7 + $0x1b0] ss:$12 sps:$4 sm:$0xff]   ;;  %v1696_v57 = vld [vmem:[#allocation7 + $0x258] ss:$12 sps:$4 sm:$0xff]  }
  0x61   :  { %892 = vmatpush1.bf16.msra.mxu0 %v1601_v18  ;;  %v1671_v30 = vld [vmem:[#allocation7 + $0x290] ss:$12 sps:$4 sm:$0xff]  }
  0x62   :  { %893 = vmatprep.subr.bf16.mxu0 %v1606_v19  ;;  %1478 = vmatpush3.bf16.msra.mxu1 %v1637_v31  ;;  %v1668_v31 = vld [vmem:[#allocation7 + $0x1c8] ss:$12 sps:$4 sm:$0xff]   ;;  %v1699_v62 = vld [vmem:[#allocation7 + $0x270] ss:$12 sps:$4 sm:$0xff]  }
  0x63   :  { %1479 = vmatprep.subr.bf16.mxu1 %v1641_v34  ;;  %v1676_v34 = vld [vmem:[#allocation7 + $0x2a8] ss:$12 sps:$4 sm:$0xff]  }
  0x65   :  { %894 = vmatpush1.bf16.msra.mxu0 %v1604_v22 }
  0x66   :  { %895 = vmatprep.subr.bf16.mxu0 %v1609_v25  ;;  %1480 = vmatpush3.bf16.msra.mxu1 %v1642_v36  ;;  %v1665_v25 = vld [vmem:[#allocation7 + $0x1b4] ss:$12 sps:$4 sm:$0xff]  }
  0x67   :  { %1481 = vmatprep.subr.bf16.mxu1 %v1646_v48  ;;  %v1673_v36 = vld [vmem:[#allocation7 + $0x1e0] ss:$12 sps:$4 sm:$0xff]  }
  0x68   :  { %v1690_v48 = vld [vmem:[#allocation7 + $0x22c] ss:$12 sps:$4 sm:$0xff]  }
  0x69   :  { %896 = vmatpush1.bf16.msra.mxu0 %v1607_v28  ;;  %v1667_v28 = vld [vmem:[#allocation7 + $0x1b8] ss:$12 sps:$4 sm:$0xff]  }
  0x6a   :  { %897 = vmatprep.subr.bf16.mxu0 %v1612_v29  ;;  %1482 = vmatpush3.bf16.msra.mxu1 %v1647_v50  ;;  %v1670_v29 = vld [vmem:[#allocation7 + $0x1cc] ss:$12 sps:$4 sm:$0xff]  }
  0x6b   :  { %1483 = vmatprep.subr.bf16.mxu1 %v1651_v52  ;;  %v1692_v52 = vld [vmem:[#allocation7 + $0x230] ss:$12 sps:$4 sm:$0xff]  }
  0x6d   :  { %898 = vmatpush1.bf16.msra.mxu0 %v1610_v32  ;;  %v1672_v32 = vld [vmem:[#allocation7 + $0x1d0] ss:$12 sps:$4 sm:$0xff]  }
  0x6e   :  { %899 = vmatprep.subr.bf16.mxu0 %v1615_v33  ;;  %1484 = vmatpush3.bf16.msra.mxu1 %v1652_v54  ;;  %v1675_v33 = vld [vmem:[#allocation7 + $0x1e4] ss:$12 sps:$4 sm:$0xff]  }
  0x6f   :  { %1491 = vmatprep.subr.bf16.mxu1 %v1656_v56  ;;  %v1698_v56 = vld [vmem:[#allocation7 + $0x25c] ss:$12 sps:$4 sm:$0xff]  }
  0x71   :  { %900 = vmatpush1.bf16.msra.mxu0 %v1613_v35  ;;  %v102_v35 = vsub.s32 2, %v1943_v58  ;;  %v1735_v58 = vld [vmem:[#allocation8 + $0x90] sm:$0xff]  }
  0x72   :  { %901 = vmatprep.subr.bf16.mxu0 %v1620_v37  ;;  %v1677_v37 = vld [vmem:[#allocation7 + $0x1e8] ss:$12 sps:$4 sm:$0xff]  }
  0x75   :  { %902 = vmatpush1.bf16.msra.mxu0 %v1618_v38  ;;  %v1680_v38 = vld [vmem:[#allocation7 + $0x1fc] ss:$12 sps:$4 sm:$0xff]  }
  0x76   :  { %903 = vmatprep.subr.bf16.mxu0 %v1625_v39  ;;  %v1681_v39 = vld [vmem:[#allocation7 + $0x2c0] ss:$12 sps:$4 sm:$0xff]  }
  0x79   :  { %904 = vmatpush1.bf16.msra.mxu0 %v1623_v40  ;;  %v103_v40 = vrot.slane %v1949_v60, %v102_v35  ;;  %v1701_v60 = vld [vmem:[#allocation7 + $0x274] ss:$12 sps:$4 sm:$0xff]  }
  0x7a   :  { %905 = vmatprep.subr.bf16.mxu0 %v1630_v41  ;;  %v1678_v41 = vld [vmem:[#allocation7 + $0x1f8] ss:$12 sps:$4 sm:$0xff]  }
  0x7d   :  { %906 = vmatpush1.bf16.msra.mxu0 %v1628_v42  ;;  %v1682_v42 = vld [vmem:[#allocation7 + $0x200] ss:$12 sps:$4 sm:$0xff]  }
  0x7e   :  { %907 = vmatprep.subr.bf16.mxu0 %v1635_v43  ;;  %v1685_v43 = vld [vmem:[#allocation7 + $0x214] ss:$12 sps:$4 sm:$0xff]  }
  0x81   :  { %908 = vmatpush1.bf16.msra.mxu0 %v1633_v44  ;;  %v1686_v44 = vld [vmem:[#allocation7 + $0x2d8] ss:$12 sps:$4 sm:$0xff]  }
  0x82   :  { %909 = vmatprep.subr.bf16.mxu0 %v1640_v45 }
  0x85   :  { %910 = vmatpush1.bf16.msra.mxu0 %v1638_v46  ;;  %v1683_v46 = vld [vmem:[#allocation7 + $0x210] ss:$12 sps:$4 sm:$0xff]  }
  0x86   :  { %911 = vmatprep.subr.bf16.mxu0 %v1645_v47  ;;  %v1687_v47 = vld [vmem:[#allocation7 + $0x218] ss:$12 sps:$4 sm:$0xff]  }
  0x89   :  { %912 = vmatpush1.bf16.msra.mxu0 %v1643_v49  ;;  %v1691_v49 = vld [vmem:[#allocation7 + $0x2f0] ss:$12 sps:$4 sm:$0xff]  }
  0x8a   :  { %913 = vmatprep.subr.bf16.mxu0 %v1650_v51  ;;  %v1688_v51 = vld [vmem:[#allocation7 + $0x228] ss:$12 sps:$4 sm:$0xff]  }
  0x8d   :  { %914 = vmatpush1.bf16.msra.mxu0 %v1648_v53  ;;  %v1695_v53 = vld [vmem:[#allocation7 + $0x244] ss:$12 sps:$4 sm:$0xff]  }
  0x8e   :  { %924 = vmatprep.subr.bf16.mxu0 %v1655_v55  ;;  %v1693_v55 = vld [vmem:[#allocation7 + $0x240] ss:$12 sps:$4 sm:$0xff]  }
 0x123   :  { %v170_v1 = vpop.f32.mrb[0].mxu0  ;;  %v1960_v7 = vpop.f32.mrb[0].mxu1 }
 0x124   :  { %v171_v3 = vadd.f32 %v170_v1, %v95_v63  ;;  %v172_v4 = vpop.f32.mrb[1].mxu0  ;;  %v213_v10 = vpop.f32.mrb[1].mxu1  ;;  %v212_v45 = vadd.f32 %v1960_v7, %v103_v40  ;;  %v1704_v63 = vld [vmem:[#allocation7 + $0x28c] ss:$12 sps:$4 sm:$0xff]   ;;  %v1707_v1 = vld [vmem:[#allocation7 + $0x2a4] ss:$12 sps:$4 sm:$0xff]  }
 0x125   :  { %v173_v5 = vadd.f32 %v172_v4, %v99_v0  ;;  %v174_v6 = vpop.f32.mrb[2].mxu0  ;;  %v214_v12 = vadd.f32 %v213_v10, %v107_v2  ;;  %v215_v13 = vpop.f32.mrb[2].mxu1  ;;  %v1702_v0 = vld [vmem:[#allocation7 + $0x288] ss:$12 sps:$4 sm:$0xff]   ;;  %v1705_v2 = vld [vmem:[#allocation7 + $0x2a0] ss:$12 sps:$4 sm:$0xff]  }
 0x126   :  { %v218_v8 = vmax.f32 %v171_v3, 0.0  ;;  %v175_v9 = vpop.f32.mrb[3].mxu0  ;;  %v216_v14 = vpop.f32.mrb[3].mxu1  ;;  %v220_v50 = vmax.f32 %v212_v45, 0.0  ;;  %v1710_v3 = vld [vmem:[#allocation7 + $0x2bc] ss:$12 sps:$4 sm:$0xff]  }
 0x127   :  { %v219_v11 = vmax.f32 %v173_v5, 0.0  ;;  %v221_v18 = vmax.f32 %v214_v12, 0.0  ;;  %v1708_v4 = vld [vmem:[#allocation7 + $0x2b8] ss:$12 sps:$4 sm:$0xff]   ;;  %v1713_v5 = vld [vmem:[#allocation7 + $0x2d4] ss:$12 sps:$4 sm:$0xff]  }
 0x128   :  { %v223_v19 = vpack.c.bf16 %v218_v8, %v218_v8  ;;  %v225_v54 = vpack.c.bf16 %v220_v50, %v220_v50  ;;  %v1711_v6 = vld [vmem:[#allocation7 + $0x2d0] ss:$12 sps:$4 sm:$0xff]   ;;  %v1716_v7 = vld [vmem:[#allocation7 + $0x2ec] ss:$12 sps:$4 sm:$0xff]   ;;  %v1714_v8 = vld [vmem:[#allocation7 + $0x2e8] ss:$12 sps:$4 sm:$0xff]  }
 0x129   :  { %v224_v15 = vpack.c.bf16 %v219_v11, %v219_v11  ;;  %v226_v22 = vpack.c.bf16 %v221_v18, %v221_v18  ;;  %v1717_v9 = vld [vmem:[#allocation8 + $0x40] sm:$0xff]   ;;  %v1719_v11 = vld [vmem:[#allocation8 + $0x48] sm:$0xff]   ;;  %v1721_v13 = vld [vmem:[#allocation8 + $0x50] sm:$0xff]  }
 0x12a   :  { %v1718_v10 = vld [vmem:[#allocation8] sm:$0xff]   ;;  %v1720_v12 = vld [vmem:[#allocation8 + $0x8] sm:$0xff]   ;;  %v1722_v14 = vld [vmem:[#allocation8 + $0x10] sm:$0xff]  }
 0x12b   :  { %915 = vmatprep.mubr.bf16.mxu0 %v224_v15  ;;  %997 = vmatprep.mubr.bf16.mxu1 %v224_v15  ;;  %v1723_v15 = vld [vmem:[#allocation8 + $0x58] sm:$0xff]   ;;  %v1726_v18 = vld [vmem:[#allocation8 + $0x20] sm:$0xff]  }
 0x12c   :  { %916 = vmatmul.mubr.bf16.vlgmr.msra.gmra.mrb[4].mxu0 %v223_v19  ;;  %998 = vmatmul.mubr.bf16.vlgmr.msra.gmra.mrb[4].mxu1 %v223_v19  ;;  %v1727_v19 = vld [vmem:[#allocation8 + $0x68] sm:$0xff]  }
 0x12d   :  { %925 = vmatpush1.bf16.msra.mxu0 %v1653_v16  ;;  %1492 = vmatpush3.bf16.msra.mxu1 %v1657_v17  ;;  %v1724_v16 = vld [vmem:[#allocation8 + $0x18] sm:$0xff]   ;;  %v1725_v17 = vld [vmem:[#allocation8 + $0x60] sm:$0xff]  }
 0x12e   :  { %926 = vmatprep.subr.bf16.mxu0 %v1660_v20  ;;  %1493 = vmatprep.subr.bf16.mxu1 %v1661_v21  ;;  %v1728_v20 = vld [vmem:[#allocation8 + $0x28] sm:$0xff]   ;;  %v1729_v21 = vld [vmem:[#allocation8 + $0x70] sm:$0xff]  }
 0x12f   :  { %1037 = vmatprep.mubr.bf16.mxu1 %v226_v22  ;;  %956 = vmatprep.mubr.bf16.mxu0 %v226_v22  ;;  %v1730_v22 = vld [vmem:[#allocation8 + $0x30] sm:$0xff]  }
 0x131   :  { %927 = vmatpush1.bf16.msra.mxu0 %v1658_v23  ;;  %1494 = vmatpush3.bf16.msra.mxu1 %v1662_v24  ;;  %v1731_v23 = vld [vmem:[#allocation8 + $0x78] sm:$0xff]  }
 0x132   :  { %928 = vmatprep.subr.bf16.mxu0 %v1665_v25  ;;  %1495 = vmatprep.subr.bf16.mxu1 %v1666_v26  ;;  %v1732_v24 = vld [vmem:[#allocation8 + $0x38] sm:$0xff]   ;;  %v1848_v25 = vmov 0.0  }
 0x135   :  { %929 = vmatpush1.bf16.msra.mxu0 %v1663_v27  ;;  %1496 = vmatpush3.bf16.msra.mxu1 %v1667_v28 }
 0x136   :  { %930 = vmatprep.subr.bf16.mxu0 %v1670_v29  ;;  %1497 = vmatprep.subr.bf16.mxu1 %v1671_v30 }
 0x139   :  { %931 = vmatpush1.bf16.msra.mxu0 %v1668_v31  ;;  %1498 = vmatpush3.bf16.msra.mxu1 %v1672_v32  ;;  %v222_v31 = vld [vmem:[%s1990_s5] sm:$0x7] }
 0x13a   :  { %932 = vmatprep.subr.bf16.mxu0 %v1675_v33  ;;  %1499 = vmatprep.subr.bf16.mxu1 %v1676_v34  ;;  %v367_v32 = vrot.slane %v222_v31, %v102_v35 }
 0x13d   :  { %933 = vmatpush1.bf16.msra.mxu0 %v1673_v36  ;;  %1500 = vmatpush3.bf16.msra.mxu1 %v1677_v37 }
 0x13e   :  { %934 = vmatprep.subr.bf16.mxu0 %v1680_v38  ;;  %1501 = vmatprep.subr.bf16.mxu1 %v1681_v39 }
 0x141   :  { %935 = vmatpush1.bf16.msra.mxu0 %v1678_v41  ;;  %1502 = vmatpush3.bf16.msra.mxu1 %v1682_v42  ;;  %v359_v41 = vrot.slane %v222_v31, %v94_v59  ;;  %v363_v42 = vrot.slane %v222_v31, %v98_v61  ;;  %v1736_v59 = vld [vmem:[#allocation8 + $0x98] sm:$0xff]   ;;  %v1737_v61 = vld [vmem:[#allocation8 + $0xa0] sm:$0xff]  }
 0x142   :  { %936 = vmatprep.subr.bf16.mxu0 %v1685_v43  ;;  %1503 = vmatprep.subr.bf16.mxu1 %v1686_v44 }
 0x145   :  { %937 = vmatpush1.bf16.msra.mxu0 %v1683_v46  ;;  %1504 = vmatpush3.bf16.msra.mxu1 %v1687_v47 }
 0x146   :  { %938 = vmatprep.subr.bf16.mxu0 %v1690_v48  ;;  %1505 = vmatprep.subr.bf16.mxu1 %v1691_v49 }
 0x149   :  { %939 = vmatpush1.bf16.msra.mxu0 %v1688_v51  ;;  %1506 = vmatpush3.bf16.msra.mxu1 %v1692_v52  ;;  %v1733_v51 = vld [vmem:[#allocation8 + $0x80] sm:$0xff]  }
 0x14a   :  { %940 = vmatprep.subr.bf16.mxu0 %v1695_v53  ;;  %1513 = vmatprep.subr.bf16.mxu1 %v1717_v9  ;;  %v1734_v53 = vld [vmem:[#allocation8 + $0x88] sm:$0xff]  }
 0x14c   :  { %1038 = vmatmul.mubr.bf16.vlgmr.msra.gmra.mrb[8].mxu1 %v225_v54 }
 0x14d   :  { %941 = vmatpush1.bf16.msra.mxu0 %v1693_v55  ;;  %1514 = vmatpush3.bf16.msra.mxu1 %v1718_v10  ;;  %v1739_v55 = vld [vmem:[#allocation8 + $0xb0] sm:$0xff]   ;;  %v1332_v10 = vstv %s1985_s0 }
 0x14e   :  { %942 = vmatprep.subr.bf16.mxu0 %v1698_v56  ;;  %1515 = vmatprep.subr.bf16.mxu1 %v1719_v11  ;;  %v1740_v56 = vld [vmem:[#allocation8 + $0xb8] sm:$0xff]  }
 0x151   :  { %943 = vmatpush1.bf16.msra.mxu0 %v1696_v57  ;;  %1516 = vmatpush3.bf16.msra.mxu1 %v1720_v12 }
 0x152   :  { %944 = vmatprep.subr.bf16.mxu0 %v1701_v60  ;;  %1517 = vmatprep.subr.bf16.mxu1 %v1721_v13 }
 0x155   :  { %945 = vmatpush1.bf16.msra.mxu0 %v1699_v62  ;;  %1518 = vmatpush3.bf16.msra.mxu1 %v1722_v14 }
 0x156   :  { %946 = vmatprep.subr.bf16.mxu0 %v1704_v63  ;;  %1519 = vmatprep.subr.bf16.mxu1 %v1723_v15 }
 0x159   :  { %947 = vmatpush1.bf16.msra.mxu0 %v1702_v0  ;;  %1520 = vmatpush3.bf16.msra.mxu1 %v1724_v16 }
 0x15a   :  { %948 = vmatprep.subr.bf16.mxu0 %v1707_v1  ;;  %1521 = vmatprep.subr.bf16.mxu1 %v1725_v17 }
 0x15d   :  { %949 = vmatpush1.bf16.msra.mxu0 %v1705_v2  ;;  %1522 = vmatpush3.bf16.msra.mxu1 %v1726_v18 }
 0x15e   :  { %950 = vmatprep.subr.bf16.mxu0 %v1710_v3  ;;  %1523 = vmatprep.subr.bf16.mxu1 %v1727_v19  ;;  %v1444_v3 = vld [vmem:[%s1992_s7] ss:$0 sm:$0xff] }
 0x161   :  { %951 = vmatpush1.bf16.msra.mxu0 %v1708_v4  ;;  %1524 = vmatpush3.bf16.msra.mxu1 %v1728_v20 }
 0x162   :  { %952 = vmatprep.subr.bf16.mxu0 %v1713_v5  ;;  %1525 = vmatprep.subr.bf16.mxu1 %v1729_v21 }
 0x165   :  { %953 = vmatpush1.bf16.msra.mxu0 %v1711_v6  ;;  %1526 = vmatpush3.bf16.msra.mxu1 %v1730_v22 }
 0x166   :  { %954 = vmatprep.subr.bf16.mxu0 %v1716_v7  ;;  %1527 = vmatprep.subr.bf16.mxu1 %v1731_v23 }
 0x169   :  { %955 = vmatpush1.bf16.msra.mxu0 %v1714_v8  ;;  %1528 = vmatpush3.bf16.msra.mxu1 %v1732_v24 }
 0x16a   :  { %1544 = vmatprep.subr.bf16.mxu1 %v1848_v25 }
 0x16c   :  { %957 = vmatmul.mubr.bf16.vlgmr.msra.gmra.mrb[4].mxu0 %v225_v54  ;;  %v1738_v54 = vld [vmem:[#allocation8 + $0xa8] sm:$0xff]  }
 0x1ff   :  { %v1485_v26 = vpop.f32.mrb[4].mxu1 }
 0x200   :  { %v1486_v27 = vpop.f32.mrb[5].mxu1 }
 0x201   :  { %v1487_v28 = vadd.f32 %v1486_v27, %v1485_v26  ;;  %v1488_v29 = vpop.f32.mrb[6].mxu1 }
 0x202   :  { %v1489_v30 = vpop.f32.mrb[7].mxu1 }
 0x203   :  { %v1000_v36 = vadd.f32 %v1487_v28, %v367_v32 }
 0x21f   :  { %v1507_v33 = vpop.f32.mrb[8].mxu1 }
 0x220   :  { %v1508_v34 = vpop.f32.mrb[9].mxu1 }
 0x221   :  { %v1509_v37 = vadd.f32 %v1508_v34, %v1507_v33  ;;  %v1510_v38 = vpop.f32.mrb[10].mxu1 }
 0x222   :  { %v1511_v39 = vpop.f32.mrb[11].mxu1 }
 0x223   :  { %v1040_v40 = vadd.f32 %v1509_v37, %v1000_v36 }
 0x225   :  { %v1047_v57 = vmax.f32 %v1040_v40, 0.0 }
 0x227   :  { %v1050_v60 = vpack.c.bf16 %v1047_v57, %v1047_v57 }
 0x23f   :  { %v958_v43 = vpop.f32.mrb[4].mxu0 }
 0x240   :  { %v1564_v44 = vadd.f32 %v958_v43, %v359_v41  ;;  %v960_v45 = vpop.f32.mrb[5].mxu0 }
 0x241   :  { %v1565_v46 = vadd.f32 %v960_v45, %v363_v42  ;;  %v962_v47 = vpop.f32.mrb[6].mxu0 }
 0x242   :  { %v1045_v48 = vmax.f32 %v1564_v44, 0.0  ;;  %v963_v35 = vpop.f32.mrb[7].mxu0 }
 0x243   :  { %v1046_v49 = vmax.f32 %v1565_v46, 0.0 }
 0x244   :  { %v1048_v52 = vpack.c.bf16 %v1045_v48, %v1045_v48 }
 0x245   :  { %v1049_v50 = vpack.c.bf16 %v1046_v49, %v1046_v49 }
 0x247   :  { %1282 = vmatprep.mubr.bf16.mxu1 %v1049_v50 }
 0x248   :  { %1283 = vmatmul.mubr.bf16.vlgmr.msra.gmra.mrb[12].mxu1 %v1048_v52 }
 0x249   :  { %1545 = vmatpush3.bf16.msra.mxu1 %v1733_v51  ;;  %1560 = vmatprep.mubr.msk.bf16.mxu1 %vm1849_vm1, %v1848_v25 }
 0x24a   :  { %1546 = vmatprep.subr.bf16.mxu1 %v1848_v25 }
 0x24d   :  { %1547 = vmatpush3.bf16.msra.mxu1 %v1734_v53 }
 0x24e   :  { %1548 = vmatprep.subr.bf16.mxu1 %v1848_v25 }
 0x251   :  { %1549 = vmatpush3.bf16.msra.mxu1 %v1735_v58 }
 0x252   :  { %1550 = vmatprep.subr.bf16.mxu1 %v1848_v25 }
 0x255   :  { %1551 = vmatpush3.bf16.msra.mxu1 %v1736_v59 }
 0x256   :  { %1552 = vmatprep.subr.bf16.mxu1 %v1848_v25 }
 0x259   :  { %1553 = vmatpush3.bf16.msra.mxu1 %v1737_v61 }
 0x25a   :  { %1554 = vmatprep.subr.bf16.mxu1 %v1848_v25 }
 0x25d   :  { %1555 = vmatpush3.bf16.msra.mxu1 %v1738_v54 }
 0x25e   :  { %1556 = vmatprep.subr.bf16.mxu1 %v1848_v25 }
 0x261   :  { %1557 = vmatpush3.bf16.msra.mxu1 %v1739_v55 }
 0x262   :  { %1558 = vmatprep.subr.bf16.mxu1 %v1848_v25 }
 0x265   :  { %1559 = vmatpush3.bf16.msra.mxu1 %v1740_v56 }
 0x268   :  { %1561 = vmatmul.mubr.bf16.vlgmr.msra.gmra.mrb[16].mxu1 %v1050_v60 }
 0x31b   :  { %v1529_v62 = vpop.f32.mrb[12].mxu1 }
 0x31c   :  { %v1530_v63 = vpop.f32.mrb[13].mxu1 }
 0x31d   :  { %v1531_v0 = vadd.f32 %v1530_v63, %v1529_v62  ;;  %v1532_v1 = vpop.f32.mrb[14].mxu1 }
 0x31e   :  { %v1533_v2 = vpop.f32.mrb[15].mxu1 }
 0x31f   :  { %v1285_v4 = vadd.f32 %v1531_v0, %v1444_v3 }
 0x33b   :  { %v1324_v5 = vpop.f32.mrb[16].mxu1 }
 0x33c   :  { %v1325_v6 = vadd.f32 %v1324_v5, %v1285_v4  ;;  %v1562_v7 = vpop.f32.mrb[17].mxu1 }
 0x33d   :  { %v1327_v8 = vpop.f32.mrb[18].mxu1 }
 0x33e   :  { %1741 = vtanh.f32 %v1325_v6  ;;  %v1563_v9 = vpop.f32.mrb[19].mxu1 }
 0x348   :  { %v1742_v11 = vpop.eup %1741 }
 0x349   :  { %v1333_v12 = vmul.f32 %v1742_v11, %v1332_v10 }
 0x34b   :  { %1334 = vst [vmem:[%s1993_s8] sm:$0xff] %v1333_v12 }
 0x34c   :  { %1339 = vsyncpa [#allocation4], 1 }
 0x34d   :  { %1340 = vsyncpa [#allocation6], 1 }
 0x34e   :  { %1341 = vsyncpa [#allocation9], 1 }

</bundles_post_ra>
